<compile_context>
chip_gen: v7x
topology: tpu7x:2x2x1
jax: 0.10.0
libtpu: 0.0.40
codegen_flags: <defaults>
</compile_context>

<pallas_src>
import functools
from typing import NamedTuple, Optional

import jax
import jax.numpy as jnp
import numpy as np
from jax import lax
from jax.experimental import pallas as pl
from jax.experimental.pallas import tpu as pltpu

LANES = 128
_STRIP_BASE = 512          # in-kernel reduction strip (rows) for large tiles


class Plan(NamedTuple):
    block_rows: int                       # rows per grid step (per core)
    strip: int                            # in-kernel strip rows (divides block_rows)
    ncores: int                           # leading "parallel" grid axis extent
    steps_per_core: int                   # reduction-axis trip count
    padded_rows: int                      # total packed rows = ncores*steps*block_rows
    vmem_limit_bytes: Optional[int]


def _round_up(x, m):
    return ((x + m - 1) // m) * m


def _device_budget():
    """(max_block_rows, ncores, vmem_limit_bytes) for the local TPU generation."""
    try:
        kind = jax.devices()[0].device_kind.lower()
    except Exception:
        kind = ""
    if "v5 lite" in kind or "v5e" in kind:
        return 2048, 1, None              # 3 x 2 x 1 MiB = 6 MiB < 16 MiB default scope
    if "v6" in kind:
        return 4096, 1, None              # 3 x 2 x 2 MiB = 12 MiB < 32 MiB default scope
    if "v7" in kind:
        return 8192, 2, 48 << 20          # 64 MiB physical VMEM/TC -> raise the scope
    return 2048, 1, None                  # conservative default (v4/v5p/unknown)


def plan(total_elems):
    """Pick tiling for `total_elems` packed f32 elements, clamped to the data
    size so small models never pad/stream whole empty tiles."""
    max_rows, ncores, vmem = _device_budget()
    rows_needed = pl.cdiv(max(int(total_elems), 1), LANES)
    per_core = max(1, pl.cdiv(rows_needed, ncores))
    steps = pl.cdiv(per_core, max_rows)
    even = pl.cdiv(per_core, steps)       # evenly spread rows -> minimal tail padding
    if even <= _STRIP_BASE:
        block_rows = max(8, _round_up(even, 8))
        strip = block_rows
    else:
        block_rows = _round_up(even, _STRIP_BASE)
        strip = _STRIP_BASE
    padded_rows = ncores * steps * block_rows
    return Plan(block_rows, strip, ncores, steps, padded_rows, vmem)


def pack(tree, cfg: Plan, dtype=jnp.float32):
    """Flatten (sorted-name order), concat, zero-pad, reshape to (rows, 128).

    star_params / fisher_diag are constant in EWC -> pack them ONCE and reuse.
    fisher_diag may be packed as bf16 (halves its HBM traffic); keep params and
    star_params in f32 so (p - star) does not lose precision.
    """
    names = sorted(tree.keys())
    flat = jnp.concatenate(
        [jnp.asarray(tree[n]).reshape(-1).astype(dtype) for n in names])
    total = flat.shape[0]
    pad = cfg.padded_rows * LANES - total
    if pad < 0:
        raise ValueError("Plan is too small for this parameter set; re-plan().")
    flat = jnp.pad(flat, (0, pad))
    return flat.reshape(cfg.padded_rows, LANES)


def _fisher_penalty_kernel(p_ref, s_ref, f_ref, acc_ref, *, strip):
    """Accumulate sum(fisher * (p - star)^2) over one (block_rows, 128) tile.

    acc_ref is this core's resident (8, 128) output block: it stays in VMEM
    across the reduction axis (grid axis 1) and is written back to HBM once.
    The tile is consumed in (strip, 128) chunks accumulated into a vreg carry,
    so the full (block_rows, 128) intermediates never materialize in VMEM.
    """
    @pl.when(pl.program_id(1) == 0)
    def _init():
        acc_ref[...] = jnp.zeros_like(acc_ref)

    block_rows = p_ref.shape[0]
    n_strips = block_rows // strip

    def body(i, acc):
        r0 = pl.multiple_of(i * strip, strip)
        pv = p_ref[pl.ds(r0, strip), :].astype(jnp.float32)
        sv = s_ref[pl.ds(r0, strip), :].astype(jnp.float32)
        fv = f_ref[pl.ds(r0, strip), :].astype(jnp.float32)
        d = pv - sv
        w = fv * d * d
        # (8,128)-tile-aligned reshape: leading axis indexes whole vreg groups,
        # so this sum lowers to pure elementwise VPU adds (no XLU work).
        return acc + jnp.sum(w.reshape(strip // 8, 8, LANES), axis=0)

    partial = lax.fori_loop(0, n_strips, body,
                            jnp.zeros((8, LANES), jnp.float32), unroll=True)
    acc_ref[...] += partial


@functools.partial(jax.jit,
                   static_argnames=("block_rows", "strip", "ncores",
                                    "steps_per_core", "vmem_limit_bytes"))
def _fisher_penalty_call(p2, s2, f2, lam, *, block_rows, strip, ncores,
                         steps_per_core, vmem_limit_bytes):
    def in_map(i, j):
        return (i * steps_per_core + j, 0)

    n_elems = p2.shape[0] * LANES
    bytes_accessed = (n_elems * (p2.dtype.itemsize + s2.dtype.itemsize +
                                 f2.dtype.itemsize) + ncores * 8 * LANES * 4)
    cost = pl.CostEstimate(flops=4 * n_elems, transcendentals=0,
                           bytes_accessed=bytes_accessed)

    cp = dict(dimension_semantics=("parallel", "arbitrary"))
    if vmem_limit_bytes is not None:
        cp["vmem_limit_bytes"] = vmem_limit_bytes

    out = pl.pallas_call(
        functools.partial(_fisher_penalty_kernel, strip=strip),
        out_shape=jax.ShapeDtypeStruct((ncores * 8, LANES), jnp.float32),
        grid_spec=pltpu.PrefetchScalarGridSpec(
            num_scalar_prefetch=0,
            grid=(ncores, steps_per_core),
            in_specs=[
                pl.BlockSpec((block_rows, LANES), in_map),
                pl.BlockSpec((block_rows, LANES), in_map),
                pl.BlockSpec((block_rows, LANES), in_map),
            ],
            out_specs=pl.BlockSpec((8, LANES), lambda i, j: (i, 0)),
        ),
        compiler_params=pltpu.CompilerParams(**cp),
        cost_estimate=cost,
    )(p2, s2, f2)

    # lam factored out of the streaming loop: one scalar multiply at the end.
    return lam.astype(jnp.float32) * jnp.sum(out)


def fisher_penalty_packed(p2, s2, f2, lam, cfg: Plan):
    """Run the Pallas reduction on pre-packed (rows, 128) slabs."""
    expected = (cfg.padded_rows, LANES)
    if p2.shape != expected or s2.shape != expected or f2.shape != expected:
        raise ValueError("Packed slabs do not match the supplied Plan "
                         "(stale pre-packed fisher/star?).")
    return _fisher_penalty_call(
        p2, s2, f2, jnp.asarray(lam, jnp.float32),
        block_rows=cfg.block_rows, strip=cfg.strip, ncores=cfg.ncores,
        steps_per_core=cfg.steps_per_core,
        vmem_limit_bytes=cfg.vmem_limit_bytes)


def fisher_penalty(params, fisher_diag, star_params, lam,
                   fisher_dtype=jnp.float32):
    """Convenience wrapper: packs all three trees every call (prefer packing
    fisher_diag / star_params once, as in __main__)."""
    total = sum(int(np.prod(np.shape(v))) for v in params.values())
    cfg = plan(total)
    return fisher_penalty_packed(
        pack(params, cfg), pack(star_params, cfg),
        pack(fisher_diag, cfg, dtype=fisher_dtype), lam, cfg)


def _reference(params, fisher_diag, star_params, lam):
    loss = jnp.float32(0.0)
    for n in sorted(params.keys()):
        d = params[n].astype(jnp.float32) - star_params[n].astype(jnp.float32)
        loss = loss + jnp.sum(lam * fisher_diag[n].astype(jnp.float32) * d * d)
    return loss


if __name__ == "__main__":
    key = jax.random.PRNGKey(0)

    # Deterministic synthetic "model" parameters (small NCHW conv + fc layer).
    shapes = {
        "conv1.weight": (4, 3, 3, 3),
        "conv1.bias": (4,),
        "fc.weight": (8, 4 * 16 * 16),
        "fc.bias": (8,),
    }

    params, fisher_diag, star_params = {}, {}, {}
    for name, shape in sorted(shapes.items()):
        key, k1, k2, k3 = jax.random.split(key, 4)
        params[name] = jax.random.normal(k1, shape, dtype=jnp.float32)
        star_params[name] = jax.random.normal(k2, shape, dtype=jnp.float32)
        # Fisher diagonal is non-negative (it is E[grad^2]).
        fisher_diag[name] = jax.random.uniform(k3, shape, dtype=jnp.float32)

    lam = 0.5
    total = sum(int(np.prod(s)) for s in shapes.values())
    ref = jax.block_until_ready(_reference(params, fisher_diag, star_params, lam))

    # --- 1) f32 everywhere (exact semantics of the PyTorch module) ----------
    cfg = plan(total)
    f2 = pack(fisher_diag, cfg)      # constant slabs: pack ONCE in real EWC use
    s2 = pack(star_params, cfg)
    p2 = pack(params, cfg)           # live params (see TODO about avoiding this)
    loss = jax.block_until_ready(fisher_penalty_packed(p2, s2, f2, lam, cfg))
    np.testing.assert_allclose(np.asarray(loss), np.asarray(ref),
                               rtol=1e-5, atol=1e-5)

    # --- 2) bf16 fisher stream (1/3 fewer HBM bytes on one of three streams) -
    f2_bf16 = pack(fisher_diag, cfg, dtype=jnp.bfloat16)
    loss_bf16 = jax.block_until_ready(
        fisher_penalty_packed(p2, s2, f2_bf16, lam, cfg))
    fisher_q = {n: v.astype(jnp.bfloat16).astype(jnp.float32)
                for n, v in fisher_diag.items()}
    ref_q = jax.block_until_ready(_reference(params, fisher_q, star_params, lam))
    np.testing.assert_allclose(np.asarray(loss_bf16), np.asarray(ref_q),
                               rtol=5e-5, atol=1e-4)

    # --- 3) forced multi-core / multi-step / multi-strip plan ----------------
    rows_needed = pl.cdiv(total, LANES)
    small_block, small_strip, small_cores = 16, 8, 2
    small_steps = pl.cdiv(rows_needed, small_cores * small_block)
    cfg_small = Plan(small_block, small_strip, small_cores, small_steps,
                     small_cores * small_steps * small_block, None)
    loss_small = jax.block_until_ready(
        fisher_penalty_packed(pack(params, cfg_small),
                              pack(star_params, cfg_small),
                              pack(fisher_diag, cfg_small), lam, cfg_small))
    np.testing.assert_allclose(np.asarray(loss_small), np.asarray(ref),
                               rtol=1e-5, atol=1e-5)

    print("KERNEL_OK")
</pallas_src>

<mosaic_0001>
module attributes {stable_mosaic.version = 11 : i64} {
  func.func @_fisher_penalty_kernel(%arg0: i32, %arg1: i32, %arg2: memref<72x128xf32, #tpu.memory_space<vmem>>, %arg3: memref<72x128xf32, #tpu.memory_space<vmem>>, %arg4: memref<72x128xf32, #tpu.memory_space<vmem>>, %arg5: memref<8x128xf32, #tpu.memory_space<vmem>>) attributes {dimension_semantics = [#tpu.dimension_semantics<parallel>, #tpu.dimension_semantics<arbitrary>], iteration_bounds = array<i64: 1, 1>, scalar_prefetch = 0 : i64, scratch_operands = 0 : i64, tpu.core_type = #tpu.core_type<tc>, window_params = [{transform_indices = @transform_0, window_bounds = array<i64: 72, 128>}, {transform_indices = @transform_1, window_bounds = array<i64: 72, 128>}, {transform_indices = @transform_2, window_bounds = array<i64: 72, 128>}, {transform_indices = @transform_3, window_bounds = array<i64: 8, 128>}]} {
    %c0_i32 = arith.constant 0 : i32
    %0 = arith.cmpi eq, %arg1, %c0_i32 : i32
    %1 = arith.extui %0 : i1 to i32
    %c0_i32_0 = arith.constant 0 : i32
    %2 = arith.cmpi ne, %1, %c0_i32_0 : i32
    scf.if %2 {
      %cst_9 = arith.constant 0.000000e+00 : f32
      %21 = vector.broadcast %cst_9 : f32 to vector<8x128xf32>
      %c0_10 = arith.constant 0 : index
      %c0_11 = arith.constant 0 : index
      %22 = vector.load %arg5[%c0_10, %c0_11] : memref<8x128xf32, #tpu.memory_space<vmem>>, vector<8x128xf32>
      tpu.vector_store %arg5[%c0_10, %c0_11], %21 {strides = array<i32>} : memref<8x128xf32, #tpu.memory_space<vmem>>, vector<8x128xf32>,
    } else {
    }
    %cst = arith.constant 0.000000e+00 : f32
    %3 = vector.broadcast %cst : f32 to vector<8x128xf32>
    %c0_i32_1 = arith.constant 0 : i32
    %c72_i32 = arith.constant 72 : i32
    %4 = arith.muli %c0_i32_1, %c72_i32 : i32
    %5 = tpu.assume_multiple %4, 72 : i32
    %6 = arith.index_cast %5 : i32 to index
    %c0 = arith.constant 0 : index
    %7 = vector.load %arg2[%6, %c0] : memref<72x128xf32, #tpu.memory_space<vmem>>, vector<72x128xf32>
    %8 = arith.index_cast %5 : i32 to index
    %c0_2 = arith.constant 0 : index
    %9 = vector.load %arg3[%8, %c0_2] : memref<72x128xf32, #tpu.memory_space<vmem>>, vector<72x128xf32>
    %10 = arith.index_cast %5 : i32 to index
    %c0_3 = arith.constant 0 : index
    %11 = vector.load %arg4[%10, %c0_3] : memref<72x128xf32, #tpu.memory_space<vmem>>, vector<72x128xf32>
    %12 = arith.subf %7, %9 : vector<72x128xf32>
    %13 = arith.mulf %11, %12 : vector<72x128xf32>
    %14 = arith.mulf %13, %12 : vector<72x128xf32>
    %15 = vector.shape_cast %14 : vector<72x128xf32> to vector<9x8x128xf32>
    %cst_4 = arith.constant dense<0.000000e+00> : vector<8x128xf32>
    %16 = vector.multi_reduction <add>, %15, %cst_4 [0] : vector<9x8x128xf32> to vector<8x128xf32>
    %17 = arith.addf %3, %16 : vector<8x128xf32>
    %c1_i32 = arith.constant 1 : i32
    %c0_5 = arith.constant 0 : index
    %c0_6 = arith.constant 0 : index
    %18 = vector.load %arg5[%c0_5, %c0_6] : memref<8x128xf32, #tpu.memory_space<vmem>>, vector<8x128xf32>
    %19 = arith.addf %18, %17 : vector<8x128xf32>
    %c0_7 = arith.constant 0 : index
    %c0_8 = arith.constant 0 : index
    %20 = vector.load %arg5[%c0_7, %c0_8] : memref<8x128xf32, #tpu.memory_space<vmem>>, vector<8x128xf32>
    tpu.vector_store %arg5[%c0_7, %c0_8], %19 {strides = array<i32>} : memref<8x128xf32, #tpu.memory_space<vmem>>, vector<8x128xf32>,
    return
  }
  func.func @transform_0(%arg0: i32, %arg1: i32) -> (i32, i32) {
    %c1_i32 = arith.constant 1 : i32
    %0 = arith.muli %arg0, %c1_i32 : i32
    %1 = arith.addi %0, %arg1 : i32
    %c0_i32 = arith.constant 0 : i32
    %c0_i32_0 = arith.constant 0 : i32
    return %1, %c0_i32 : i32, i32
  }
  func.func @transform_1(%arg0: i32, %arg1: i32) -> (i32, i32) {
    %c1_i32 = arith.constant 1 : i32
    %0 = arith.muli %arg0, %c1_i32 : i32
    %1 = arith.addi %0, %arg1 : i32
    %c0_i32 = arith.constant 0 : i32
    %c0_i32_0 = arith.constant 0 : i32
    return %1, %c0_i32 : i32, i32
  }
  func.func @transform_2(%arg0: i32, %arg1: i32) -> (i32, i32) {
    %c1_i32 = arith.constant 1 : i32
    %0 = arith.muli %arg0, %c1_i32 : i32
    %1 = arith.addi %0, %arg1 : i32
    %c0_i32 = arith.constant 0 : i32
    %c0_i32_0 = arith.constant 0 : i32
    return %1, %c0_i32 : i32, i32
  }
  func.func @transform_3(%arg0: i32, %arg1: i32) -> (i32, i32) {
    %c0_i32 = arith.constant 0 : i32
    %c0_i32_0 = arith.constant 0 : i32
    return %arg0, %c0_i32 : i32, i32
  }
}

</mosaic_0001>

<bundles_post_ra>
// kernel: _fisher_penalty_call.1
= control target key start
LH: loop header
LB: loop body
LE: loop exit
PB: predicated region body
PF: predicated region fallthrough
CT: control target
= control target key end

     0   :  { %8 = vsyncpa [#allocation3], 0  ;;  %s306_s0 = inlined_call_operand.hbm [shape: f32[72,128], index: 0, kind: input, shape index: {}]   ;;  %s307_s1 = inlined_call_operand.hbm [shape: f32[72,128], index: 1, kind: input, shape index: {}]   ;;  %s308_s2 = inlined_call_operand.hbm [shape: f32[72,128], index: 2, kind: input, shape index: {}]   ;;  %s309_s3 = inlined_call_operand.vmem [shape: f32[8,128], index: 3, kind: output, shape index: {}]  }
   0x1   :  { %9 = vsyncpa [#allocation5], 0  ;;  %s226_s12 = smov [#allocation4]   ;;  %s227_s14 = smov [#allocation2]  }
   0x2   :  { %s35_s13 = sshll.u32 %s226_s12, 4  ;;  %s19_s15 = sshll.u32 %s227_s14, 4  ;;  %s36_s13 = int_to_ptr.vmem [resolvable:$true] %s35_s13  ;;  %s251_s15 = int_to_ptr.vmem [resolvable:$true] %s19_s15 }
   0x3   :  { %s156_s18 = scalar_lea.hbm %s307_s1, 1152 }
   0x4   :  { %p157_p0 = scmp.ne.s32.totalorder %s307_s1, %s156_s18  ;;  %p160_p1 = scmp.lt.u32.totalorder %s156_s18, %s307_s1 }
   0x6   :  { %p162_p2 = pnand %p160_p1, %p157_p0 }
   0x8   :  { %165 = shalt.err (!%p162_p2)
}
   0x9   :  { %s166_s23 = scalar_lea.vmem %s36_s13, 1152  ;;  %p171_p4 = scmp.lt.s32.totalorder %s36_s13, %s36_s13 }
   0xa   :  { %p167_p3 = scmp.ne.s32.totalorder %s36_s13, %s166_s23  ;;  %p172_p5 = scmp.lt.s32.totalorder %s166_s23, %s166_s23 }
   0xc   :  { %p173_p6 = por %p172_p5, %p171_p4 }
   0xe   :  { %p174_p7 = pnand %p173_p6, %p167_p3 }
  0x10   :  { %177 = shalt.err (!%p174_p7)
}
  0x11   :  { %s228_s24 = smov 128   ;;  %s229_s25 = smov 8  }
  0x12   :  { %41 = dma.hbm_to_vmem [thread:$0]  %s307_s1, 1152, %s36_s13, [#allocation5], %s228_s24, %s228_s24, %s229_s25  }
  0x13   :  { %s178_s30 = scalar_lea.hbm %s306_s0, 1152 }
  0x14   :  { %p179_p8 = scmp.ne.s32.totalorder %s306_s0, %s178_s30  ;;  %p182_p9 = scmp.lt.u32.totalorder %s178_s30, %s306_s0 }
  0x16   :  { %p184_p10 = pnand %p182_p9, %p179_p8 }
  0x18   :  { %187 = shalt.err (!%p184_p10)
}
  0x19   :  { %s188_s8 = scalar_lea.vmem %s251_s15, 1152  ;;  %p193_p12 = scmp.lt.s32.totalorder %s251_s15, %s251_s15 }
  0x1a   :  { %p189_p11 = scmp.ne.s32.totalorder %s251_s15, %s188_s8  ;;  %p194_p13 = scmp.lt.s32.totalorder %s188_s8, %s188_s8 }
  0x1c   :  { %p195_p0 = por %p194_p13, %p193_p12 }
  0x1e   :  { %p196_p1 = pnand %p195_p0, %p189_p11 }
  0x20   :  { %199 = shalt.err (!%p196_p1)
}
  0x21   :  { %25 = dma.hbm_to_vmem [thread:$0]  %s306_s0, 1152, %s251_s15, [#allocation3], %s228_s24, %s228_s24, %s229_s25  }
  0x22   :  { %s230_s10 = smov [#allocation6]   ;;  %s200_s14 = scalar_lea.hbm %s308_s2, 1152 }
  0x23   :  { %s51_s11 = sshll.u32 %s230_s10, 4  ;;  %p201_p2 = scmp.ne.s32.totalorder %s308_s2, %s200_s14  ;;  %s52_s11 = int_to_ptr.vmem [resolvable:$true] %s51_s11 }
  0x24   :  { %p204_p3 = scmp.lt.u32.totalorder %s200_s14, %s308_s2 }
  0x26   :  { %p206_p4 = pnand %p204_p3, %p201_p2 }
  0x28   :  { %209 = shalt.err (!%p206_p4)
}
  0x29   :  { %s210_s20 = scalar_lea.vmem %s52_s11, 1152  ;;  %p215_p6 = scmp.lt.s32.totalorder %s52_s11, %s52_s11 }
  0x2a   :  { %p211_p5 = scmp.ne.s32.totalorder %s52_s11, %s210_s20  ;;  %p216_p7 = scmp.lt.s32.totalorder %s210_s20, %s210_s20 }
  0x2c   :  { %p217_p8 = por %p216_p7, %p215_p6 }
  0x2e   :  { %p218_p9 = pnand %p217_p8, %p211_p5 }
  0x30   :  { %221 = shalt.err (!%p218_p9)
}
  0x31   :  { %57 = dma.hbm_to_vmem [thread:$0]  %s308_s2, 1152, %s52_s11, [#allocation5], %s228_s24, %s228_s24, %s229_s25  }
  0x32   :  { %222 = dma.done.wait [#allocation3], 1152  }
  0x33   :  { %223 = vsyncadd [#allocation3], 4294966144 }
  0x34   :  { %224 = dma.done.wait [#allocation5], 2304  }
  0x35   :  { %225 = vsyncadd [#allocation5], 4294964992  ;;  %v78_v0 = vld [vmem:[#allocation2] sm:$0xff]  ;;  %v79_v1 = vld [vmem:[#allocation2 + $0x8] sm:$0xff] }
  0x36   :  { %v80_v2 = vld [vmem:[#allocation2 + $0x10] sm:$0xff]  ;;  %v81_v3 = vld [vmem:[#allocation2 + $0x18] sm:$0xff]  ;;  %v82_v4 = vld [vmem:[#allocation2 + $0x20] sm:$0xff] }
  0x37   :  { %v87_v5 = vld [vmem:[#allocation4] sm:$0xff]  ;;  %v88_v6 = vld [vmem:[#allocation4 + $0x8] sm:$0xff]  ;;  %v89_v7 = vld [vmem:[#allocation4 + $0x10] sm:$0xff] }
  0x38   :  { %v90_v8 = vld [vmem:[#allocation4 + $0x18] sm:$0xff]  ;;  %v91_v9 = vld [vmem:[#allocation4 + $0x20] sm:$0xff]  ;;  %v105_v10 = vsub.f32 %v78_v0, %v87_v5  ;;  %v106_v11 = vsub.f32 %v79_v1, %v88_v6  ;;  %v107_v12 = vsub.f32 %v80_v2, %v89_v7  ;;  %v84_v14 = vld [vmem:[#allocation2 + $0x30] sm:$0xff] }
  0x39   :  { %v83_v13 = vld [vmem:[#allocation2 + $0x28] sm:$0xff]  ;;  %v92_v15 = vld [vmem:[#allocation4 + $0x28] sm:$0xff]  ;;  %v108_v16 = vsub.f32 %v81_v3, %v90_v8  ;;  %v97_v18 = vld [vmem:[#allocation6 + $0x8] sm:$0xff]  ;;  %v109_v20 = vsub.f32 %v82_v4, %v91_v9 }
  0x3a   :  { %v96_v17 = vld [vmem:[#allocation6] sm:$0xff]  ;;  %v98_v19 = vld [vmem:[#allocation6 + $0x10] sm:$0xff]  ;;  %v93_v21 = vld [vmem:[#allocation4 + $0x30] sm:$0xff]  ;;  %v115_v25 = vmul.f32 %v106_v11, %v97_v18  ;;  %v110_v27 = vsub.f32 %v83_v13, %v92_v15 }
  0x3b   :  { %v99_v22 = vld [vmem:[#allocation6 + $0x18] sm:$0xff]  ;;  %v100_v23 = vld [vmem:[#allocation6 + $0x20] sm:$0xff]  ;;  %v114_v24 = vmul.f32 %v105_v10, %v96_v17  ;;  %v116_v26 = vmul.f32 %v107_v12, %v98_v19  ;;  %v85_v29 = vld [vmem:[#allocation2 + $0x38] sm:$0xff]  ;;  %v111_v33 = vsub.f32 %v84_v14, %v93_v21 }
  0x3c   :  { %v117_v28 = vmul.f32 %v108_v16, %v99_v22  ;;  %v94_v30 = vld [vmem:[#allocation4 + $0x38] sm:$0xff]  ;;  %v101_v31 = vld [vmem:[#allocation6 + $0x28] sm:$0xff]  ;;  %v118_v34 = vmul.f32 %v109_v20, %v100_v23  ;;  %v124_v35 = vmul.f32 %v115_v25, %v106_v11  ;;  %v95_v38 = vld [vmem:[#allocation4 + $0x40] sm:$0xff] }
  0x3d   :  { %v123_v32 = vmul.f32 %v114_v24, %v105_v10  ;;  %v125_v36 = vmul.f32 %v116_v26, %v107_v12  ;;  %v86_v37 = vld [vmem:[#allocation2 + $0x40] sm:$0xff]  ;;  %v112_v40 = vsub.f32 %v85_v29, %v94_v30  ;;  %v119_v41 = vmul.f32 %v110_v27, %v101_v31  ;;  %v103_v44 = vld [vmem:[#allocation6 + $0x38] sm:$0xff]  ;;  %v104_v49 = vld [vmem:[#allocation6 + $0x40] sm:$0xff] }
  0x3e   :  { %v102_v39 = vld [vmem:[#allocation6 + $0x30] sm:$0xff]  ;;  %v126_v42 = vmul.f32 %v117_v28, %v108_v16  ;;  %v113_v45 = vsub.f32 %v86_v37, %v95_v38  ;;  %v127_v47 = vmul.f32 %v118_v34, %v109_v20 }
  0x3f   :  { %v132_v43 = vadd.f32 %v124_v35, %v123_v32  ;;  %v120_v46 = vmul.f32 %v111_v33, %v102_v39  ;;  %v121_v50 = vmul.f32 %v112_v40, %v103_v44  ;;  %v128_v51 = vmul.f32 %v119_v41, %v110_v27 }
  0x40   :  { %v122_v53 = vmul.f32 %v113_v45, %v104_v49 }
  0x41   :  { %v133_v48 = vadd.f32 %v132_v43, %v125_v36  ;;  %v129_v54 = vmul.f32 %v120_v46, %v111_v33  ;;  %v130_v56 = vmul.f32 %v121_v50, %v112_v40 }
  0x42   :  { %v131_v58 = vmul.f32 %v122_v53, %v113_v45 }
  0x43   :  { %v134_v52 = vadd.f32 %v133_v48, %v126_v42 }
  0x45   :  { %v135_v55 = vadd.f32 %v134_v52, %v127_v47 }
  0x47   :  { %v136_v57 = vadd.f32 %v135_v55, %v128_v51 }
  0x49   :  { %v137_v59 = vadd.f32 %v136_v57, %v129_v54 }
  0x4b   :  { %v138_v60 = vadd.f32 %v137_v59, %v130_v56 }
  0x4d   :  { %v139_v61 = vadd.f32 %v138_v60, %v131_v58 }
  0x4f   :  { %143 = vst [vmem:[%s309_s3] sm:$0xff] %v139_v61 }
  0x50   :  { %148 = vsyncpa [#allocation3], 1 }
  0x51   :  { %149 = vsyncpa [#allocation5], 1 }

</bundles_post_ra>
